<compile_context>
chip_gen: v7x
topology: tpu7x:2x2x1
jax: 0.10.0
libtpu: 0.0.40
codegen_flags: <defaults>
</compile_context>

<pallas_src>
import functools

import jax
import jax.numpy as jnp
from jax.experimental import pallas as pl
from jax.experimental.pallas import tpu as pltpu


def _round_up(v, m):
    return ((v + m - 1) // m) * m


def _vmem_capacity_bytes():
    try:
        cap = getattr(pltpu.get_tpu_info(), "vmem_capacity_bytes", None)
        if cap:
            return int(cap)
    except Exception:
        pass
    return 64 * 1024 * 1024          # conservative: v7x per-TensorCore VMEM


def _working_set_bytes(tm, tn, td, n_j, n_d):
    buf = 2 * 2 * (tm + tn) * td                       # double-buffered bf16 x/y tiles
    scr = (tm * tn * 4 if n_d > 1 else 0) + (tm * 8 if n_j > 1 else 0)
    work = 2 * tm * tn * 4                             # f32 dot result + epilogue temps
    small = 2 * (4 * tm + tn) * 4                      # norms, oldmin, outputs
    return buf + scr + work + small


def _choose_tiles(X, Y, D, budget):
    """Returns (tm, tn, td, Xp, Yp, Dp)."""
    Dp = _round_up(D, 128)
    Xp8 = _round_up(max(X, 1), 8)

    # tm: large for arithmetic intensity; >= 2 i-tiles when X is big enough so
    # both v7x TensorCores get work along the "parallel" axis.
    if Xp8 >= 1024:
        tm = 512
    elif Xp8 >= 256:
        tm = _round_up(-(-Xp8 // 2), 8)
    else:
        tm = Xp8

    def fits(tm_, tn_, td_, n_j, n_d):
        return _working_set_bytes(tm_, tn_, td_, n_j, n_d) <= budget

    # Path 1: whole Y and whole D resident in VMEM -> each operand streamed
    # from HBM exactly once; no acc scratch; no cross-tile min merge.
    yp_res = _round_up(Y, 256 if Y > 128 else 128)
    if fits(tm, yp_res, Dp, 1, 1):
        return tm, yp_res, Dp, _round_up(X, tm), yp_res, Dp

    # Path 2: whole D resident, Y tiled (tn multiple of 256 for the 256-wide
    # MXU of v6e/v7x; also a multiple of 128, so fine on v5e).
    for tn in (512, 256):
        if fits(tm, tn, Dp, 2, 1):
            return tm, tn, Dp, _round_up(X, tm), _round_up(Y, tn), Dp

    # Path 3 (very large D): tile D as well; adds an f32 accumulator scratch.
    tn, td = 256, 512
    while not fits(tm, tn, td, 2, 2):
        if td > 128:
            td //= 2
        elif tn > 128:
            tn = 128
        elif tm > 8:
            tm = max(8, _round_up(tm // 2, 8))
        else:
            break
    return tm, tn, td, _round_up(X, tm), _round_up(Y, tn), _round_up(D, td)


def _knn_kernel(x_ref, y_ref, xsq_ref, ysq_ref, old_ref,
                omin_ref, oidx_ref, *scratch,
                cosine, tn, y_valid, y_padded, n_j, n_d):
    idx = 0
    acc_ref = None
    rmin_ref = rarg_ref = None
    if n_d > 1:
        acc_ref = scratch[idx]
        idx += 1
    if n_j > 1:
        rmin_ref, rarg_ref = scratch[idx], scratch[idx + 1]

    j = pl.program_id(1)
    d = pl.program_id(2)

    # MXU: contract the D chunk of both operands directly (bf16 in, f32 acc).
    part = jax.lax.dot_general(
        x_ref[...], y_ref[...], (((1,), (1,)), ((), ())),
        preferred_element_type=jnp.float32)

    if n_d > 1:
        @pl.when(d == 0)
        def _init():
            acc_ref[...] = part

        @pl.when(d != 0)
        def _acc():
            acc_ref[...] = acc_ref[...] + part

    def _epilogue():
        acc = acc_ref[...] if n_d > 1 else part            # (tm, tn) f32
        xsq = xsq_ref[...]                                  # (tm, 1)  f32
        ysq = ysq_ref[...]                                  # (1, tn)  f32
        if cosine:
            # min over cosine similarities, matching the torch module.
            vals = acc * (jax.lax.rsqrt(xsq) * jax.lax.rsqrt(ysq))
        else:
            # squared euclidean; sqrt deferred to the final (tm, 1) vector.
            vals = (xsq + ysq) - 2.0 * acc

        col = jax.lax.broadcasted_iota(jnp.int32, vals.shape, 1)
        if n_j > 1:
            col = col + j * tn
        if y_padded:                                        # compiled out if Yp == Y
            vals = jnp.where(col < y_valid, vals, jnp.inf)

        tile_min = jnp.min(vals, axis=1, keepdims=True)     # (tm, 1)
        tile_arg = jnp.min(
            jnp.where(vals == tile_min, col, jnp.iinfo(jnp.int32).max),
            axis=1, keepdims=True)                           # (tm, 1)

        def _write(best, arg):
            if not cosine:
                best = jnp.sqrt(jnp.maximum(best, 0.0))
            omin_ref[...] = jnp.minimum(best, old_ref[...])
            # Unconditional index write, same as the PyTorch module.
            oidx_ref[...] = arg

        if n_j > 1:
            @pl.when(j == 0)
            def _first():
                rmin_ref[...] = tile_min
                rarg_ref[...] = tile_arg

            @pl.when(j != 0)
            def _merge():
                better = tile_min < rmin_ref[...]
                rmin_ref[...] = jnp.where(better, tile_min, rmin_ref[...])
                rarg_ref[...] = jnp.where(better, tile_arg, rarg_ref[...])

            @pl.when(j == n_j - 1)
            def _final():
                _write(rmin_ref[...], rarg_ref[...])
        else:
            _write(tile_min, tile_arg)

    if n_d > 1:
        pl.when(d == n_d - 1)(_epilogue)
    else:
        _epilogue()


def knn_min_pallas(xf, yf, old_min, *, cosine=False, mm_dtype=jnp.bfloat16,
                   tile_override=None):
    """xf: (X, D) f32, yf: (Y, D) f32, old_min: (X, 1) f32.
    Returns (new_min (X, 1) f32, nn_idx_local (X, 1) int32)."""
    X, D = xf.shape
    Y, Dy = yf.shape
    assert D == Dy

    cap = _vmem_capacity_bytes()
    budget = cap // 4
    if tile_override is not None:
        tm, tn, td = tile_override
        Xp, Yp, Dp = _round_up(X, tm), _round_up(Y, tn), _round_up(D, td)
    else:
        tm, tn, td, Xp, Yp, Dp = _choose_tiles(X, Y, D, budget)
    n_i, n_j, n_d = Xp // tm, Yp // tn, Dp // td

    # Hoisted exact f32 norms (computed once by XLA, not per tile in-kernel).
    xf = xf.astype(jnp.float32)
    yf = yf.astype(jnp.float32)
    xsq = jnp.sum(xf * xf, axis=1, keepdims=True)          # (X, 1)
    ysq = jnp.sum(yf * yf, axis=1)[None, :]                 # (1, Y) lane-dense

    # Matmul operands cast to bf16 in the wrapper (halves HBM traffic).
    x_mm = xf.astype(mm_dtype)
    y_mm = yf.astype(mm_dtype)

    # Zero padding: zero feature columns don't change dots or norms; padded y
    # columns are masked to +inf in-kernel; padded x rows are sliced off below.
    if (Xp, Dp) != (X, D):
        x_mm = jnp.pad(x_mm, ((0, Xp - X), (0, Dp - D)))
    if (Yp, Dp) != (Y, D):
        y_mm = jnp.pad(y_mm, ((0, Yp - Y), (0, Dp - D)))
    if Xp != X:
        xsq = jnp.pad(xsq, ((0, Xp - X), (0, 0)))
        old_min = jnp.pad(old_min, ((0, Xp - X), (0, 0)), constant_values=jnp.inf)
    if Yp != Y:
        ysq = jnp.pad(ysq, ((0, 0), (0, Yp - Y)))

    kernel = functools.partial(
        _knn_kernel, cosine=cosine, tn=tn, y_valid=Y, y_padded=(Yp != Y),
        n_j=n_j, n_d=n_d)

    scratch = []
    if n_d > 1:
        scratch.append(pltpu.VMEM((tm, tn), jnp.float32))   # gram accumulator
    if n_j > 1:
        scratch.append(pltpu.VMEM((tm, 1), jnp.float32))    # running min
        scratch.append(pltpu.VMEM((tm, 1), jnp.int32))      # running argmin

    itemsize = jnp.dtype(mm_dtype).itemsize
    cost = pl.CostEstimate(
        flops=2 * Xp * Yp * Dp,
        transcendentals=2 * Xp + (Xp + Yp if cosine else 0),
        bytes_accessed=itemsize * (Xp * Dp * n_j + Yp * Dp * n_i)
        + 4 * (3 * Xp + Yp))

    ws = _working_set_bytes(tm, tn, td, n_j, n_d)
    vmem_limit = int(min(max(2 * ws + (4 << 20), 16 << 20), int(0.75 * cap)))

    new_min, nn_idx = pl.pallas_call(
        kernel,
        out_shape=(jax.ShapeDtypeStruct((Xp, 1), jnp.float32),
                   jax.ShapeDtypeStruct((Xp, 1), jnp.int32)),
        grid_spec=pltpu.PrefetchScalarGridSpec(
            num_scalar_prefetch=0,
            grid=(n_i, n_j, n_d),
            in_specs=[
                pl.BlockSpec((tm, td), lambda i, j, d: (i, d)),   # x (bf16)
                pl.BlockSpec((tn, td), lambda i, j, d: (j, d)),   # y (bf16)
                pl.BlockSpec((tm, 1), lambda i, j, d: (i, 0)),    # ||x||^2 (f32)
                pl.BlockSpec((1, tn), lambda i, j, d: (0, j)),    # ||y||^2 (f32)
                pl.BlockSpec((tm, 1), lambda i, j, d: (i, 0)),    # old min
            ],
            out_specs=(
                pl.BlockSpec((tm, 1), lambda i, j, d: (i, 0)),
                pl.BlockSpec((tm, 1), lambda i, j, d: (i, 0)),
            ),
            scratch_shapes=scratch),
        compiler_params=pltpu.CompilerParams(
            dimension_semantics=("parallel", "arbitrary", "arbitrary"),
            vmem_limit_bytes=vmem_limit),
        cost_estimate=cost,
    )(x_mm, y_mm, xsq, ysq, old_min)

    return new_min[:X], nn_idx[:X]


class KNNComputerNoCheck:
    """JAX/Pallas port of the PyTorch KNNComputerNoCheck module (K=1 path)."""

    def __init__(self, sample_num, K=1, cosine_dist=False):
        self.K = K
        self.cosine_dist = cosine_dist
        self.num_computed = jnp.zeros([], jnp.float32)
        if K == 1:
            self.min_dists = jnp.full((sample_num,), jnp.inf, jnp.float32)
            # TODO(synk): PyTorch uses int64 indices; int32 used here (TPU-friendly).
            self.nn_indices = jnp.zeros((sample_num,), jnp.int32)
        else:
            # TODO(synk): K>1 branch uses a data-dependent per-row while loop over
            # the sorted (dist ++ old_min) row to skip duplicate zeros; not ported.
            raise NotImplementedError("Only K=1 is implemented in Pallas.")

    def forward(self, x, x_idx_start, y, y_idx_start):
        x_bsize, y_bsize = x.shape[0], y.shape[0]
        xf = x.reshape(x_bsize, -1).astype(jnp.float32)
        yf = y.reshape(y_bsize, -1).astype(jnp.float32)

        old = jax.lax.dynamic_slice(self.min_dists, (x_idx_start,),
                                    (x_bsize,)).reshape(x_bsize, 1)

        new_min, nn_local = knn_min_pallas(xf, yf, old, cosine=self.cosine_dist)
        nn_idx = nn_local + jnp.int32(y_idx_start)

        self.min_dists = jax.lax.dynamic_update_slice(
            self.min_dists, new_min.reshape(x_bsize), (x_idx_start,))
        self.nn_indices = jax.lax.dynamic_update_slice(
            self.nn_indices, nn_idx.reshape(x_bsize), (x_idx_start,))

    def get_mean_nn_dist(self, sidx, eidx):
        if self.K == 1:
            return jnp.mean(self.min_dists[sidx:eidx])


# ----------------------------- self-test -----------------------------------


def _reference_dist(x, y, cosine):
    xb, yb = x.shape[0], y.shape[0]
    xf = x.reshape(xb, -1).astype(jnp.float32)
    yf = y.reshape(yb, -1).astype(jnp.float32)
    if cosine:
        xn = xf / jnp.linalg.norm(xf, axis=1, keepdims=True)
        yn = yf / jnp.linalg.norm(yf, axis=1, keepdims=True)
        return xn @ yn.T
    return jnp.sqrt(jnp.sum((xf[:, None, :] - yf[None, :, :]) ** 2, axis=-1))


def _indices_ok(got_idx, ref_arg, dist, ref_min, y_start, yb, tol=3e-3):
    # Exact match, or (near-ties / bf16-Gram rounding) the chosen index points
    # at a distance within tolerance of the true minimum.
    n = got_idx.shape[0]
    local = jnp.clip(got_idx - y_start, 0, yb - 1)
    chosen = dist[jnp.arange(n), local]
    in_range = (got_idx >= y_start) & (got_idx < y_start + yb)
    near = jnp.abs(chosen - ref_min) <= tol * (1.0 + jnp.abs(ref_min))
    return bool(jnp.all(in_range & ((got_idx == ref_arg + y_start) | near)))


if __name__ == "__main__":
    key = jax.random.PRNGKey(0)
    SAMPLE_NUM = 32

    configs = [
        # (x NCHW shape, y NCHW shape, x_idx_start, y_idx_start)
        ((8, 4, 16, 16), (8, 4, 16, 16), 4, 3),    # aligned: D = 1024
        ((5, 3, 10, 10), (6, 3, 10, 10), 9, 2),    # ragged: exercises pad + mask
    ]

    for (xs, ys, x_start, y_start) in configs:
        key, kx, ky = jax.random.split(key, 3)
        x = jax.random.normal(kx, xs, jnp.float32)   # NCHW, like PyTorch
        y = jax.random.normal(ky, ys, jnp.float32)
        xb, yb = xs[0], ys[0]

        for cosine in (False, True):
            knn = KNNComputerNoCheck(SAMPLE_NUM, K=1, cosine_dist=cosine)
            knn.forward(x, x_start, y, y_start)
            md = jax.block_until_ready(knn.min_dists)
            ni = jax.block_until_ready(knn.nn_indices)

            dist = _reference_dist(x, y, cosine)
            ref_min = jnp.min(dist, axis=1)
            ref_arg = jnp.argmin(dist, axis=1).astype(jnp.int32)

            got_min = md[x_start:x_start + xb]
            got_idx = ni[x_start:x_start + xb]
            assert jnp.allclose(got_min, ref_min, rtol=3e-3, atol=3e-3), \
                (xs, cosine, got_min, ref_min)
            assert _indices_ok(got_idx, ref_arg, dist, ref_min, y_start, yb), \
                (xs, cosine, got_idx, ref_arg)

            # Untouched rows keep their initial values.
            untouched = jnp.ones((SAMPLE_NUM,), bool).at[x_start:x_start + xb].set(False)
            assert bool(jnp.all(jnp.where(untouched, jnp.isinf(md), True)))
            assert bool(jnp.all(jnp.where(untouched, ni == 0, True)))

    # Extra coverage: forced small tiles exercise the tiled-D / tiled-Y /
    # multi-i-tile code paths (acc scratch + cross-tile running-min merge).
    key, kx, ky = jax.random.split(key, 3)
    Xb, Yb, Df = 256, 200, 256
    xf = jax.random.normal(kx, (Xb, Df), jnp.float32)
    yf = jax.random.normal(ky, (Yb, Df), jnp.float32)
    for cosine in (False, True):
        old = jnp.full((Xb, 1), jnp.inf, jnp.float32)
        got_min, got_idx = knn_min_pallas(xf, yf, old, cosine=cosine,
                                          tile_override=(128, 128, 128))
        got_min = jax.block_until_ready(got_min)[:, 0]
        got_idx = jax.block_until_ready(got_idx)[:, 0]
        dist = _reference_dist(xf, yf, cosine)
        ref_min = jnp.min(dist, axis=1)
        ref_arg = jnp.argmin(dist, axis=1).astype(jnp.int32)
        assert jnp.allclose(got_min, ref_min, rtol=3e-3, atol=3e-3), (cosine,)
        assert _indices_ok(got_idx, ref_arg, dist, ref_min, 0, Yb), (cosine,)

    print("KERNEL_OK")
</pallas_src>

<mosaic_0001>
module attributes {stable_mosaic.version = 11 : i64} {
  func.func @_knn_kernel(%arg0: i32, %arg1: i32, %arg2: i32, %arg3: memref<8x1024xbf16, #tpu.memory_space<vmem>>, %arg4: memref<128x1024xbf16, #tpu.memory_space<vmem>>, %arg5: memref<8x1xf32, #tpu.memory_space<vmem>>, %arg6: memref<1x128xf32, #tpu.memory_space<vmem>>, %arg7: memref<8x1xf32, #tpu.memory_space<vmem>>, %arg8: memref<8x1xf32, #tpu.memory_space<vmem>>, %arg9: memref<8x1xi32, #tpu.memory_space<vmem>>) attributes {dimension_semantics = [#tpu.dimension_semantics<parallel>, #tpu.dimension_semantics<arbitrary>, #tpu.dimension_semantics<arbitrary>], iteration_bounds = array<i64: 1, 1, 1>, scalar_prefetch = 0 : i64, scratch_operands = 0 : i64, tpu.core_type = #tpu.core_type<tc>, window_params = [{transform_indices = @transform_0, window_bounds = array<i64: 8, 1024>}, {transform_indices = @transform_1, window_bounds = array<i64: 128, 1024>}, {transform_indices = @transform_2, window_bounds = array<i64: 8, 1>}, {transform_indices = @transform_3, window_bounds = array<i64: 1, 128>}, {transform_indices = @transform_4, window_bounds = array<i64: 8, 1>}, {transform_indices = @transform_5, window_bounds = array<i64: 8, 1>}, {transform_indices = @transform_6, window_bounds = array<i64: 8, 1>}]} {
    %c0 = arith.constant 0 : index
    %c0_0 = arith.constant 0 : index
    %0 = vector.load %arg3[%c0, %c0_0] : memref<8x1024xbf16, #tpu.memory_space<vmem>>, vector<8x1024xbf16>
    %c0_1 = arith.constant 0 : index
    %c0_2 = arith.constant 0 : index
    %1 = vector.load %arg4[%c0_1, %c0_2] : memref<128x1024xbf16, #tpu.memory_space<vmem>>, vector<128x1024xbf16>
    %cst = arith.constant dense<0.000000e+00> : vector<8x128xf32>
    %2 = tpu.matmul %0, %1, %cst {dimension_numbers = #tpu.dot_dimension_numbers<[1], [1], [0], [0], [0, 0, 1, 0], [], []>} : vector<8x1024xbf16>, vector<128x1024xbf16>, vector<8x128xf32> -> vector<8x128xf32>
    %c0_3 = arith.constant 0 : index
    %c0_4 = arith.constant 0 : index
    %3 = vector.load %arg5[%c0_3, %c0_4] : memref<8x1xf32, #tpu.memory_space<vmem>>, vector<8x1xf32>
    %c0_5 = arith.constant 0 : index
    %c0_6 = arith.constant 0 : index
    %4 = vector.load %arg6[%c0_5, %c0_6] : memref<1x128xf32, #tpu.memory_space<vmem>>, vector<1x128xf32>
    %5 = vector.broadcast %3 : vector<8x1xf32> to vector<8x128xf32>
    %6 = vector.broadcast %4 : vector<1x128xf32> to vector<8x128xf32>
    %7 = arith.addf %5, %6 : vector<8x128xf32>
    %cst_7 = arith.constant 2.000000e+00 : f32
    %8 = vector.broadcast %cst_7 : f32 to vector<8x128xf32>
    %9 = arith.mulf %8, %2 : vector<8x128xf32>
    %10 = arith.subf %7, %9 : vector<8x128xf32>
    %11 = tpu.iota {dimensions = array<i32: 1>} : vector<8x128xi32>
    %c8_i32 = arith.constant 8 : i32
    %12 = vector.broadcast %c8_i32 : i32 to vector<8x128xi32>
    %13 = arith.cmpi slt, %11, %12 : vector<8x128xi32>
    %cst_8 = arith.constant 0x7F800000 : f32
    %14 = vector.broadcast %cst_8 : f32 to vector<8x128xf32>
    %15 = arith.select %13, %10, %14 : vector<8x128xi1>, vector<8x128xf32>
    %cst_9 = arith.constant dense<0x7F800000> : vector<8xf32>
    %16 = vector.multi_reduction <minimumf>, %15, %cst_9 [1] : vector<8x128xf32> to vector<8xf32>
    %17 = vector.shape_cast %16 : vector<8xf32> to vector<8x1xf32>
    %18 = vector.broadcast %17 : vector<8x1xf32> to vector<8x128xf32>
    %19 = arith.cmpf oeq, %15, %18 : vector<8x128xf32>
    %c2147483647_i32 = arith.constant 2147483647 : i32
    %20 = vector.broadcast %c2147483647_i32 : i32 to vector<8x128xi32>
    %21 = arith.select %19, %11, %20 : vector<8x128xi1>, vector<8x128xi32>
    %cst_10 = arith.constant dense<2147483647> : vector<8xi32>
    %22 = vector.multi_reduction <minsi>, %21, %cst_10 [1] : vector<8x128xi32> to vector<8xi32>
    %23 = vector.shape_cast %22 : vector<8xi32> to vector<8x1xi32>
    %cst_11 = arith.constant 0.000000e+00 : f32
    %24 = vector.broadcast %cst_11 : f32 to vector<8x1xf32>
    %25 = arith.maximumf %17, %24 : vector<8x1xf32>
    %26 = math.sqrt %25 : vector<8x1xf32>
    %c0_12 = arith.constant 0 : index
    %c0_13 = arith.constant 0 : index
    %27 = vector.load %arg7[%c0_12, %c0_13] : memref<8x1xf32, #tpu.memory_space<vmem>>, vector<8x1xf32>
    %28 = arith.minimumf %26, %27 : vector<8x1xf32>
    %c0_14 = arith.constant 0 : index
    %c0_15 = arith.constant 0 : index
    %29 = vector.load %arg8[%c0_14, %c0_15] : memref<8x1xf32, #tpu.memory_space<vmem>>, vector<8x1xf32>
    tpu.vector_store %arg8[%c0_14, %c0_15], %28 {strides = array<i32>} : memref<8x1xf32, #tpu.memory_space<vmem>>, vector<8x1xf32>,
    %c0_16 = arith.constant 0 : index
    %c0_17 = arith.constant 0 : index
    %30 = vector.load %arg9[%c0_16, %c0_17] : memref<8x1xi32, #tpu.memory_space<vmem>>, vector<8x1xi32>
    tpu.vector_store %arg9[%c0_16, %c0_17], %23 {strides = array<i32>} : memref<8x1xi32, #tpu.memory_space<vmem>>, vector<8x1xi32>,
    return
  }
  func.func @transform_0(%arg0: i32, %arg1: i32, %arg2: i32) -> (i32, i32) {
    %c0_i32 = arith.constant 0 : i32
    return %arg0, %arg2 : i32, i32
  }
  func.func @transform_1(%arg0: i32, %arg1: i32, %arg2: i32) -> (i32, i32) {
    %c0_i32 = arith.constant 0 : i32
    return %arg1, %arg2 : i32, i32
  }
  func.func @transform_2(%arg0: i32, %arg1: i32, %arg2: i32) -> (i32, i32) {
    %c0_i32 = arith.constant 0 : i32
    %c0_i32_0 = arith.constant 0 : i32
    return %arg0, %c0_i32 : i32, i32
  }
  func.func @transform_3(%arg0: i32, %arg1: i32, %arg2: i32) -> (i32, i32) {
    %c0_i32 = arith.constant 0 : i32
    %c0_i32_0 = arith.constant 0 : i32
    return %c0_i32, %arg1 : i32, i32
  }
  func.func @transform_4(%arg0: i32, %arg1: i32, %arg2: i32) -> (i32, i32) {
    %c0_i32 = arith.constant 0 : i32
    %c0_i32_0 = arith.constant 0 : i32
    return %arg0, %c0_i32 : i32, i32
  }
  func.func @transform_5(%arg0: i32, %arg1: i32, %arg2: i32) -> (i32, i32) {
    %c0_i32 = arith.constant 0 : i32
    %c0_i32_0 = arith.constant 0 : i32
    return %arg0, %c0_i32 : i32, i32
  }
  func.func @transform_6(%arg0: i32, %arg1: i32, %arg2: i32) -> (i32, i32) {
    %c0_i32 = arith.constant 0 : i32
    %c0_i32_0 = arith.constant 0 : i32
    return %arg0, %c0_i32 : i32, i32
  }
}

</mosaic_0001>

<bundles_post_ra>
// kernel: tpu_custom_call.1
= control target key start
LH: loop header
LB: loop body
LE: loop exit
PB: predicated region body
PF: predicated region fallthrough
CT: control target
= control target key end

     0   :  { %12 = vsyncpa [#allocation3], 0  ;;  %s942_s0 = inlined_call_operand.hbm [shape: bf16[8,1024], index: 0, kind: input, shape index: {}]   ;;  %s943_s1 = inlined_call_operand.hbm [shape: bf16[128,1024], index: 1, kind: input, shape index: {}]   ;;  %s944_s2 = inlined_call_operand.vmem [shape: f32[8,1], index: 2, kind: input, shape index: {}]   ;;  %s945_s3 = inlined_call_operand.vmem [shape: f32[1,128], index: 3, kind: input, shape index: {}]   ;;  %s946_s4 = inlined_call_operand.vmem [shape: f32[8,1], index: 4, kind: input, shape index: {}]   ;;  %s947_s5 = inlined_call_operand.vmem [shape: f32[8,1], index: 5, kind: output, shape index: {0}]   ;;  %s948_s6 = inlined_call_operand.vmem [shape: s32[8,1], index: 6, kind: output, shape index: {1}]  }
   0x1   :  { %13 = vsyncpa [#allocation5], 0  ;;  %s832_s21 = smov [#allocation2]   ;;  %s833_s23 = smov [#allocation4]  }
   0x2   :  { %s20_s22 = sshll.u32 %s832_s21, 4  ;;  %s29_s24 = sshll.u32 %s833_s23, 4  ;;  %s21_s22 = int_to_ptr.vmem [resolvable:$true] %s20_s22  ;;  %s872_s24 = int_to_ptr.vmem [resolvable:$true] %s29_s24 }
   0x3   :  { %s784_s27 = scalar_lea.hbm %s942_s0, 512 }
   0x4   :  { %p785_p0 = scmp.ne.s32.totalorder %s942_s0, %s784_s27  ;;  %p788_p1 = scmp.lt.u32.totalorder %s784_s27, %s942_s0 }
   0x6   :  { %p790_p2 = pnand %p788_p1, %p785_p0 }
   0x8   :  { %793 = shalt.err (!%p790_p2)
}
   0x9   :  { %s794_s8 = scalar_lea.vmem %s21_s22, 512  ;;  %p799_p4 = scmp.lt.s32.totalorder %s21_s22, %s21_s22 }
   0xa   :  { %p795_p3 = scmp.ne.s32.totalorder %s21_s22, %s794_s8  ;;  %p800_p5 = scmp.lt.s32.totalorder %s794_s8, %s794_s8 }
   0xc   :  { %p801_p6 = por %p800_p5, %p799_p4 }
   0xe   :  { %p802_p7 = pnand %p801_p6, %p795_p3 }
  0x10   :  { %805 = shalt.err (!%p802_p7)
}
  0x11   :  { %23 = dma.hbm_to_vmem [thread:$0]  %s942_s0, 512, %s21_s22, [#allocation3]  }
  0x12   :  { %s806_s13 = scalar_lea.hbm %s943_s1, 8192 }
  0x13   :  { %p807_p8 = scmp.ne.s32.totalorder %s943_s1, %s806_s13  ;;  %p810_p9 = scmp.lt.u32.totalorder %s806_s13, %s943_s1 }
  0x15   :  { %p812_p10 = pnand %p810_p9, %p807_p8 }
  0x17   :  { %815 = shalt.err (!%p812_p10)
}
  0x18   :  { %s816_s18 = scalar_lea.vmem %s872_s24, 8192  ;;  %p821_p12 = scmp.lt.s32.totalorder %s872_s24, %s872_s24 }
  0x19   :  { %p817_p11 = scmp.ne.s32.totalorder %s872_s24, %s816_s18  ;;  %p822_p13 = scmp.lt.s32.totalorder %s816_s18, %s816_s18 }
  0x1b   :  { %p823_p0 = por %p822_p13, %p821_p12 }
  0x1d   :  { %p824_p1 = pnand %p823_p0, %p817_p11 }
  0x1f   :  { %827 = shalt.err (!%p824_p1)
}
  0x20   :  { %s834_s0 = smov 512   ;;  %s835_s19 = smov 32  }
  0x21   :  { %35 = dma.hbm_to_vmem [thread:$0]  %s943_s1, 8192, %s872_s24, [#allocation5], %s834_s0, %s834_s0, %s835_s19  }
  0x22   :  { %828 = dma.done.wait [#allocation3], 512  }
  0x23   :  { %829 = vsyncadd [#allocation3], 4294966784 }
  0x24   :  { %830 = dma.done.wait [#allocation5], 8192  }
  0x25   :  { %831 = vsyncadd [#allocation5], 4294959104  ;;  %v53_v0 = vld [vmem:[#allocation4] sm:$0xff]  ;;  %v55_v2 = vld [vmem:[#allocation4 + $0x10] sm:$0xff]  ;;  %v836_v18 = vmov 0   ;;  %vm673_vm4 = vcmask 7168  }
  0x26   :  { %v57_v1 = vld [vmem:[#allocation4 + $0x20] sm:$0xff]  ;;  %v59_v4 = vld [vmem:[#allocation4 + $0x30] sm:$0xff]  ;;  %773 = vset.pattern.permute.xlu0 %v836_v18 }
  0x27   :  { %v695_v3 = vcombine.high %v53_v0, %v57_v1  ;;  %v694_v5 = vcombine.low %v53_v0, %v57_v1  ;;  %v61_v6 = vld [vmem:[#allocation4 + $0x40] sm:$0xff]  ;;  %v699_v8 = vcombine.high %v55_v2, %v59_v4  ;;  %v698_v9 = vcombine.low %v55_v2, %v59_v4  ;;  %v63_v11 = vld [vmem:[#allocation4 + $0x50] sm:$0xff]  ;;  %v54_v4 = vld [vmem:[#allocation4 + $0x8] sm:$0xff] }
  0x28   :  { %v65_v7 = vld [vmem:[#allocation4 + $0x60] sm:$0xff]  ;;  %v67_v12 = vld [vmem:[#allocation4 + $0x70] sm:$0xff] }
  0x29   :  { %v703_v10 = vcombine.high %v61_v6, %v65_v7  ;;  %465 = vmatprep.subr.bf16.mxu1 %v695_v3  ;;  %v707_v13 = vcombine.high %v63_v11, %v67_v12  ;;  %545 = vmatprep.subr.bf16.mxu0 %v699_v8  ;;  %v69_v14 = vld [vmem:[#allocation4 + $0x80] sm:$0xff]  ;;  %v71_v16 = vld [vmem:[#allocation4 + $0x90] sm:$0xff]  ;;  %v702_v19 = vcombine.low %v61_v6, %v65_v7  ;;  %v56_v6 = vld [vmem:[#allocation4 + $0x18] sm:$0xff] }
  0x2a   :  { %466 = vmatpush1.bf16.xpose.msra.mxu1 %v694_v5  ;;  %546 = vmatpush1.bf16.xpose.msra.mxu0 %v698_v9  ;;  %v73_v15 = vld [vmem:[#allocation4 + $0xa0] sm:$0xff]  ;;  %v75_v17 = vld [vmem:[#allocation4 + $0xb0] sm:$0xff]  ;;  %v706_v20 = vcombine.low %v63_v11, %v67_v12  ;;  %v58_v5 = vld [vmem:[#allocation4 + $0x28] sm:$0xff] }
  0x2b   :  { %467 = vmatprep.subr.bf16.mxu1 %v703_v10  ;;  %547 = vmatprep.subr.bf16.mxu0 %v707_v13  ;;  %v711_v21 = vcombine.high %v69_v14, %v73_v15  ;;  %v715_v22 = vcombine.high %v71_v16, %v75_v17  ;;  %v903_v23 = vld [vmem:[#allocation2] sm:$0xff]  ;;  %v907_v25 = vld [vmem:[#allocation2 + $0x10] sm:$0xff]  ;;  %v710_v31 = vcombine.low %v69_v14, %v73_v15  ;;  %v60_v7 = vld [vmem:[#allocation4 + $0x38] sm:$0xff] }
  0x2c   :  { %v687_v24 = vcombine.high %v903_v23, %v903_v23  ;;  %v691_v26 = vcombine.high %v907_v25, %v907_v25  ;;  %v77_v27 = vld [vmem:[#allocation4 + $0xc0] sm:$0xff]  ;;  %v79_v29 = vld [vmem:[#allocation4 + $0xd0] sm:$0xff]  ;;  %v714_v32 = vcombine.low %v71_v16, %v75_v17  ;;  %v697_v10 = vcombine.high %v54_v4, %v58_v5  ;;  %v62_v12 = vld [vmem:[#allocation4 + $0x48] sm:$0xff] }
  0x2d   :  { %v81_v28 = vld [vmem:[#allocation4 + $0xe0] sm:$0xff]  ;;  %v83_v30 = vld [vmem:[#allocation4 + $0xf0] sm:$0xff]  ;;  %v701_v11 = vcombine.high %v56_v6, %v60_v7  ;;  %v66_v13 = vld [vmem:[#allocation4 + $0x68] sm:$0xff]  ;;  %v686_v14 = vcombine.low %v903_v23, %v903_v23  ;;  %v696_v18 = vcombine.low %v54_v4, %v58_v5 }
  0x2e   :  { %497 = vmatprep.mubr.bf16.mxu1 %v687_v24  ;;  %577 = vmatprep.mubr.bf16.mxu0 %v691_v26  ;;  %v719_v33 = vcombine.high %v77_v27, %v81_v28  ;;  %v723_v34 = vcombine.high %v79_v29, %v83_v30  ;;  %v85_v35 = vld [vmem:[#allocation4 + $0x100] sm:$0xff]  ;;  %v87_v38 = vld [vmem:[#allocation4 + $0x110] sm:$0xff]  ;;  %v718_v40 = vcombine.low %v77_v27, %v81_v28  ;;  %v64_v15 = vld [vmem:[#allocation4 + $0x58] sm:$0xff] }
  0x2f   :  { %v89_v36 = vld [vmem:[#allocation4 + $0x120] sm:$0xff]  ;;  %v91_v39 = vld [vmem:[#allocation4 + $0x130] sm:$0xff]  ;;  %v722_v41 = vcombine.low %v79_v29, %v83_v30  ;;  %v68_v16 = vld [vmem:[#allocation4 + $0x78] sm:$0xff]  ;;  %v704_v30 = vcombine.low %v62_v12, %v66_v13 }
  0x30   :  { %v625_v37 = vld [vmem:[%s944_s2] sm:$0xff]  ;;  %v727_v42 = vcombine.high %v85_v35, %v89_v36  ;;  %v731_v43 = vcombine.high %v87_v38, %v91_v39  ;;  %v95_v46 = vld [vmem:[#allocation4 + $0x150] sm:$0xff]  ;;  %v726_v48 = vcombine.low %v85_v35, %v89_v36  ;;  %v730_v49 = vcombine.low %v87_v38, %v91_v39  ;;  %v916_v17 = vld [vmem:[#allocation2 + $0x8] sm:$0xff] }
  0x31   :  { %629 = vperm.xlu0 %773, %v625_v37   ;;  %v93_v44 = vld [vmem:[#allocation4 + $0x140] sm:$0xff]  ;;  %v99_v47 = vld [vmem:[#allocation4 + $0x170] sm:$0xff]  ;;  %v709_v24 = vcombine.high %v64_v15, %v68_v16  ;;  %v689_v26 = vcombine.high %v916_v17, %v916_v17  ;;  %v70_v27 = vld [vmem:[#allocation4 + $0x88] sm:$0xff] }
  0x32   :  { %468 = vmatpush1.bf16.xpose.msra.mxu1 %v702_v19  ;;  %548 = vmatpush1.bf16.xpose.msra.mxu0 %v706_v20  ;;  %v97_v45 = vld [vmem:[#allocation4 + $0x160] sm:$0xff]  ;;  %v739_v51 = vcombine.high %v95_v46, %v99_v47  ;;  %v103_v54 = vld [vmem:[#allocation4 + $0x190] sm:$0xff]  ;;  %v738_v57 = vcombine.low %v95_v46, %v99_v47  ;;  %v690_v19 = vcombine.low %v907_v25, %v907_v25  ;;  %v920_v20 = vld [vmem:[#allocation2 + $0x18] sm:$0xff] }
  0x33   :  { %469 = vmatprep.subr.bf16.mxu1 %v711_v21  ;;  %549 = vmatprep.subr.bf16.mxu0 %v715_v22  ;;  %v735_v50 = vcombine.high %v93_v44, %v97_v45  ;;  %v101_v52 = vld [vmem:[#allocation4 + $0x180] sm:$0xff]  ;;  %v107_v55 = vld [vmem:[#allocation4 + $0x1b0] sm:$0xff]  ;;  %v734_v56 = vcombine.low %v93_v44, %v97_v45  ;;  %v700_v21 = vcombine.low %v56_v6, %v60_v7  ;;  %v74_v28 = vld [vmem:[#allocation4 + $0xa8] sm:$0xff] }
  0x34   :  { %v105_v53 = vld [vmem:[#allocation4 + $0x1a0] sm:$0xff]  ;;  %v747_v59 = vcombine.high %v103_v54, %v107_v55  ;;  %v111_v62 = vld [vmem:[#allocation4 + $0x1d0] sm:$0xff]  ;;  %v746_v1 = vcombine.low %v103_v54, %v107_v55  ;;  %v705_v22 = vcombine.high %v62_v12, %v66_v13  ;;  %v693_v23 = vcombine.high %v920_v20, %v920_v20  ;;  %v72_v25 = vld [vmem:[#allocation4 + $0x98] sm:$0xff] }
  0x35   :  { %v743_v58 = vcombine.high %v101_v52, %v105_v53  ;;  %v109_v60 = vld [vmem:[#allocation4 + $0x1c0] sm:$0xff]  ;;  %v115_v63 = vld [vmem:[#allocation4 + $0x1f0] sm:$0xff]  ;;  %v742_v0 = vcombine.low %v101_v52, %v105_v53  ;;  %v76_v29 = vld [vmem:[#allocation4 + $0xb8] sm:$0xff]  ;;  %v712_v38 = vcombine.low %v70_v27, %v74_v28  ;;  %v688_v12 = vcombine.low %v916_v17, %v916_v17 }
  0x36   :  { %v113_v61 = vld [vmem:[#allocation4 + $0x1e0] sm:$0xff]  ;;  %v755_v3 = vcombine.high %v111_v62, %v115_v63  ;;  %v754_v9 = vcombine.low %v111_v62, %v115_v63  ;;  %v82_v35 = vld [vmem:[#allocation4 + $0xe8] sm:$0xff]  ;;  %v80_v36 = vld [vmem:[#allocation4 + $0xd8] sm:$0xff]  ;;  %v716_v39 = vcombine.low %v72_v25, %v76_v29  ;;  %v692_v13 = vcombine.low %v920_v20, %v920_v20 }
  0x37   :  { %v751_v2 = vcombine.high %v109_v60, %v113_v61  ;;  %v750_v8 = vcombine.low %v109_v60, %v113_v61  ;;  %v84_v37 = vld [vmem:[#allocation4 + $0xf8] sm:$0xff] }
  0x38   :  { %v88_v44 = vld [vmem:[#allocation4 + $0x118] sm:$0xff]  ;;  %v724_v47 = vcombine.low %v80_v36, %v84_v37 }
  0x39   :  { %v92_v45 = vld [vmem:[#allocation4 + $0x138] sm:$0xff] }
  0x3a   :  { %470 = vmatpush1.bf16.xpose.msra.mxu1 %v710_v31  ;;  %550 = vmatpush1.bf16.xpose.msra.mxu0 %v714_v32  ;;  %v708_v31 = vcombine.low %v64_v15, %v68_v16  ;;  %v713_v32 = vcombine.high %v70_v27, %v74_v28  ;;  %v96_v52 = vld [vmem:[#allocation4 + $0x158] sm:$0xff]  ;;  %v732_v55 = vcombine.low %v88_v44, %v92_v45  ;;  %v758_v15 = vld [vmem:[%s945_s3] ss:$0 sm:$0xff] }
  0x3b   :  { %471 = vmatprep.subr.bf16.mxu1 %v719_v33  ;;  %551 = vmatprep.subr.bf16.mxu0 %v723_v34  ;;  %v717_v33 = vcombine.high %v72_v25, %v76_v29  ;;  %v78_v34 = vld [vmem:[#allocation4 + $0xc8] sm:$0xff]  ;;  %v100_v53 = vld [vmem:[#allocation4 + $0x178] sm:$0xff] }
  0x3c   :  { %v720_v46 = vcombine.low %v78_v34, %v82_v35  ;;  %v104_v60 = vld [vmem:[#allocation4 + $0x198] sm:$0xff]  ;;  %v740_v63 = vcombine.low %v96_v52, %v100_v53 }
  0x3d   :  { %v108_v61 = vld [vmem:[#allocation4 + $0x1b8] sm:$0xff] }
  0x3e   :  { %v112_v4 = vld [vmem:[#allocation4 + $0x1d8] sm:$0xff]  ;;  %v748_v7 = vcombine.low %v104_v60, %v108_v61 }
  0x3f   :  { %v116_v5 = vld [vmem:[#allocation4 + $0x1f8] sm:$0xff] }
  0x42   :  { %472 = vmatpush1.bf16.xpose.msra.mxu1 %v718_v40  ;;  %552 = vmatpush1.bf16.xpose.msra.mxu0 %v722_v41  ;;  %v721_v40 = vcombine.high %v78_v34, %v82_v35  ;;  %v725_v41 = vcombine.high %v80_v36, %v84_v37 }
  0x43   :  { %473 = vmatprep.subr.bf16.mxu1 %v727_v42  ;;  %553 = vmatprep.subr.bf16.mxu0 %v731_v43  ;;  %v86_v42 = vld [vmem:[#allocation4 + $0x108] sm:$0xff] }
  0x44   :  { %v90_v43 = vld [vmem:[#allocation4 + $0x128] sm:$0xff] }
  0x45   :  { %v728_v54 = vcombine.low %v86_v42, %v90_v43 }
  0x4a   :  { %474 = vmatpush1.bf16.xpose.msra.mxu1 %v726_v48  ;;  %554 = vmatpush1.bf16.xpose.msra.mxu0 %v730_v49  ;;  %v729_v48 = vcombine.high %v86_v42, %v90_v43  ;;  %v733_v49 = vcombine.high %v88_v44, %v92_v45 }
  0x4b   :  { %475 = vmatprep.subr.bf16.mxu1 %v735_v50  ;;  %555 = vmatprep.subr.bf16.mxu0 %v739_v51  ;;  %v94_v50 = vld [vmem:[#allocation4 + $0x148] sm:$0xff] }
  0x4c   :  { %v98_v51 = vld [vmem:[#allocation4 + $0x168] sm:$0xff] }
  0x4d   :  { %v736_v62 = vcombine.low %v94_v50, %v98_v51 }
  0x52   :  { %476 = vmatpush1.bf16.xpose.msra.mxu1 %v734_v56  ;;  %556 = vmatpush1.bf16.xpose.msra.mxu0 %v738_v57  ;;  %v737_v56 = vcombine.high %v94_v50, %v98_v51  ;;  %v741_v57 = vcombine.high %v96_v52, %v100_v53 }
  0x53   :  { %477 = vmatprep.subr.bf16.mxu1 %v743_v58  ;;  %557 = vmatprep.subr.bf16.mxu0 %v747_v59  ;;  %v102_v58 = vld [vmem:[#allocation4 + $0x188] sm:$0xff] }
  0x54   :  { %v106_v59 = vld [vmem:[#allocation4 + $0x1a8] sm:$0xff] }
  0x55   :  { %v744_v6 = vcombine.low %v102_v58, %v106_v59 }
  0x5a   :  { %478 = vmatpush1.bf16.xpose.msra.mxu1 %v742_v0  ;;  %558 = vmatpush1.bf16.xpose.msra.mxu0 %v746_v1  ;;  %v745_v0 = vcombine.high %v102_v58, %v106_v59  ;;  %v749_v1 = vcombine.high %v104_v60, %v108_v61 }
  0x5b   :  { %479 = vmatprep.subr.bf16.mxu1 %v751_v2  ;;  %559 = vmatprep.subr.bf16.mxu0 %v755_v3  ;;  %v110_v2 = vld [vmem:[#allocation4 + $0x1c8] sm:$0xff] }
  0x5c   :  { %v114_v3 = vld [vmem:[#allocation4 + $0x1e8] sm:$0xff] }
  0x62   :  { %480 = vmatpush1.bf16.xpose.msra.mxu1 %v750_v8  ;;  %560 = vmatpush1.bf16.xpose.msra.mxu0 %v754_v9  ;;  %v753_v8 = vcombine.high %v110_v2, %v114_v3  ;;  %v757_v9 = vcombine.high %v112_v4, %v116_v5 }
  0x63   :  { %505 = vmatprep.subr.bf16.mxu1 %v697_v10  ;;  %585 = vmatprep.subr.bf16.mxu0 %v701_v11  ;;  %v752_v10 = vcombine.low %v110_v2, %v114_v3  ;;  %v756_v11 = vcombine.low %v112_v4, %v116_v5 }
  0x69   :  { %498 = vmatmul.mubr.bf16.vlgmr.msra.gmra.mrb[0].mxu1 %v686_v14  ;;  %578 = vmatmul.mubr.bf16.vlgmr.msra.gmra.mrb[0].mxu0 %v690_v19  ;;  %v641_v14 = vlaneseq }
  0x6a   :  { %506 = vmatpush1.bf16.xpose.msra.mxu1 %v696_v18  ;;  %586 = vmatpush1.bf16.xpose.msra.mxu0 %v700_v21 }
  0x6b   :  { %507 = vmatprep.subr.bf16.mxu1 %v705_v22  ;;  %587 = vmatprep.subr.bf16.mxu0 %v709_v24  ;;  %v642_v22 = vand.u32 127, %v641_v14 }
  0x6c   :  { %537 = vmatprep.mubr.bf16.mxu1 %v689_v26  ;;  %617 = vmatprep.mubr.bf16.mxu0 %v693_v23 }
  0x6d   :  { %vm643_vm0 = vcmp.lt.s32.totalorder %v642_v22, 8 }
  0x72   :  { %508 = vmatpush1.bf16.xpose.msra.mxu1 %v704_v30  ;;  %588 = vmatpush1.bf16.xpose.msra.mxu0 %v708_v31 }
  0x73   :  { %509 = vmatprep.subr.bf16.mxu1 %v713_v32  ;;  %589 = vmatprep.subr.bf16.mxu0 %v717_v33 }
  0x7a   :  { %510 = vmatpush1.bf16.xpose.msra.mxu1 %v712_v38  ;;  %590 = vmatpush1.bf16.xpose.msra.mxu0 %v716_v39  ;;  %v671_v39 = vld [vmem:[%s946_s4] sm:$0xff] }
  0x7b   :  { %511 = vmatprep.subr.bf16.mxu1 %v721_v40  ;;  %591 = vmatprep.subr.bf16.mxu0 %v725_v41 }
  0x82   :  { %512 = vmatpush1.bf16.xpose.msra.mxu1 %v720_v46  ;;  %592 = vmatpush1.bf16.xpose.msra.mxu0 %v724_v47 }
  0x83   :  { %513 = vmatprep.subr.bf16.mxu1 %v729_v48  ;;  %593 = vmatprep.subr.bf16.mxu0 %v733_v49 }
  0x8a   :  { %514 = vmatpush1.bf16.xpose.msra.mxu1 %v728_v54  ;;  %594 = vmatpush1.bf16.xpose.msra.mxu0 %v732_v55 }
  0x8b   :  { %515 = vmatprep.subr.bf16.mxu1 %v737_v56  ;;  %595 = vmatprep.subr.bf16.mxu0 %v741_v57 }
  0x92   :  { %516 = vmatpush1.bf16.xpose.msra.mxu1 %v736_v62  ;;  %596 = vmatpush1.bf16.xpose.msra.mxu0 %v740_v63 }
  0x93   :  { %517 = vmatprep.subr.bf16.mxu1 %v745_v0  ;;  %597 = vmatprep.subr.bf16.mxu0 %v749_v1 }
  0x9a   :  { %518 = vmatpush1.bf16.xpose.msra.mxu1 %v744_v6  ;;  %598 = vmatpush1.bf16.xpose.msra.mxu0 %v748_v7 }
  0x9b   :  { %519 = vmatprep.subr.bf16.mxu1 %v753_v8  ;;  %599 = vmatprep.subr.bf16.mxu0 %v757_v9 }
  0xa2   :  { %520 = vmatpush1.bf16.xpose.msra.mxu1 %v752_v10  ;;  %600 = vmatpush1.bf16.xpose.msra.mxu0 %v756_v11 }
  0xa9   :  { %538 = vmatmul.mubr.bf16.vlgmr.msra.gmra.mrb[0].mxu1 %v688_v12  ;;  %618 = vmatmul.mubr.bf16.vlgmr.msra.gmra.mrb[0].mxu0 %v692_v13 }
  0xb0   :  { %v630_v16 = vpop.permute.xlu0 %629 }
  0xb1   :  { %v638_v23 = vadd.f32 %v758_v15, %v630_v16 }
 0x17c   :  { %v539_v18 = vpop.f32.mrb[0].mxu1  ;;  %v619_v19 = vpop.f32.mrb[0].mxu0 }
 0x17d   :  { %v541_v21 = vpop.f32.mrb[1].mxu1  ;;  %v759_v24 = vadd.f32 %v619_v19, %v539_v18  ;;  %v621_v26 = vpop.f32.mrb[1].mxu0 }
 0x17e   :  { %v542_v27 = vpop.f32.mrb[2].mxu1  ;;  %v622_v17 = vpop.f32.mrb[2].mxu0 }
 0x17f   :  { %v543_v28 = vpop.f32.mrb[3].mxu1  ;;  %v639_v25 = vmul.f32 2.0, %v759_v24  ;;  %v623_v20 = vpop.f32.mrb[3].mxu0 }
 0x181   :  { %v640_v29 = vsub.f32 %v638_v23, %v639_v25 }
 0x183   :  { %v644_v30 = vsel %vm643_vm0, %v640_v29, inf }
 0x184   :  { %645 = vmin.xlane.f32.xlu0 %v644_v30 }
 0x211   :  { %v646_v31 = vpop.xlane.xlu0 %645 }
 0x212   :  { %vm647_vm1 = vcmp.eq.f32.partialorder %v644_v30, %v646_v31  ;;  %v663_v32 = vmax.f32 %v646_v31, 0.0 }
 0x213   :  { %v648_v33 = vsel %vm647_vm1, %v642_v22, 2147483647 }
 0x214   :  { %782 = vrsqrt.f32 %v663_v32  ;;  %v650_v34 = vshra.s32 %v648_v33, 16  ;;  %vm666_vm2 = vcmp.eq.f32.partialorder %v663_v32, inf  ;;  %v669_v38 = vand.u32 2147483648, %v663_v32 }
 0x215   :  { %vm668_vm3 = vcmp.eq.f32.partialorder %v663_v32, 0.0  ;;  %v649_v43 = vand.u32 65535, %v648_v33 }
 0x216   :  { %v652_v35 = vcvt.s32.f32 %v650_v34 }
 0x217   :  { %v651_v45 = vcvt.s32.f32 %v649_v43 }
 0x218   :  { %653 = vmin.xlane.f32.xlu1 %v652_v35 }
 0x21e   :  { %v783_v36 = vpop.eup %782 }
 0x21f   :  { %v665_v37 = vmul.f32 %v783_v36, %v663_v32 }
 0x221   :  { %v667_v40 = vsel %vm666_vm2, %v663_v32, %v665_v37 }
 0x222   :  { %v670_v41 = vsel %vm668_vm3, %v669_v38, %v667_v40 }
 0x223   :  { %v672_v42 = vmin.f32 %v670_v41, %v671_v39 }
 0x225   :  { %674 = vst.msk [vmem:[%s947_s5] sm:$0xff] %vm673_vm4, %v672_v42 }
 0x2a5   :  { %v654_v44 = vpop.xlane.xlu1 %653 }
 0x2a6   :  { %vm655_vm5 = vcmp.eq.f32.partialorder %v652_v35, %v654_v44  ;;  %v660_v47 = vcvt.f32.s32 %v654_v44 }
 0x2a7   :  { %v656_v46 = vsel %vm655_vm5, %v651_v45, inf }
 0x2a8   :  { %657 = vmin.xlane.f32.xlu1 %v656_v46  ;;  %v661_v49 = vshll.u32 %v660_v47, 16 }
 0x335   :  { %v658_v48 = vpop.xlane.xlu1 %657 }
 0x336   :  { %v659_v50 = vcvt.f32.s32 %v658_v48 }
 0x338   :  { %v662_v51 = vadd.s32 %v661_v49, %v659_v50 }
 0x33a   :  { %675 = vst.msk [vmem:[%s948_s6] sm:$0xff] %vm673_vm4, %v662_v51 }
 0x33b   :  { %684 = vsyncpa [#allocation3], 1 }
 0x33c   :  { %685 = vsyncpa [#allocation5], 1 }

</bundles_post_ra>
